<compile_context>
chip_gen: v7x
topology: tpu7x:2x2x1
jax: 0.10.0
libtpu: 0.0.40
codegen_flags: <defaults>
</compile_context>

<pallas_src>
import functools

import jax
import jax.numpy as jnp
from jax.experimental import pallas as pl
from jax.experimental.pallas import tpu as pltpu

EARTH_RAD_M = 6371011.0
EARTH_FULL_M = 6371011.0 + 250.0

_CHUNK_LANES = 1024  # one (8, 128) vreg slab of rays per inner-loop step


def _fast_recip(x):
    """EUP approximate reciprocal + one Newton-Raphson step (~1e-7 relative error)."""
    r = pl.reciprocal(x, approx=True)
    return r * (2.0 - x * r)


def _oddeven_merge_rows(a, b):
    """Batcher odd-even merge network over two individually sorted lists of row slabs.

    Each element is an (8, 128) f32 array; compare-exchanges are jnp.minimum / jnp.maximum
    (pure VPU, no XLU traffic). Produces the exact sorted merge whenever each input run is
    sorted, which holds for all non-degenerate rays (0 < t_near < t_far). ~12 comparators
    for a 5+4 merge vs ~36 for a full odd-even transposition sort.
    """
    if not a:
        return list(b)
    if not b:
        return list(a)
    if len(a) == 1 and len(b) == 1:
        return [jnp.minimum(a[0], b[0]), jnp.maximum(a[0], b[0])]
    even = _oddeven_merge_rows(a[0::2], b[0::2])
    odd = _oddeven_merge_rows(a[1::2], b[1::2])
    out = []
    for i in range(len(odd)):
        out.append(even[i])
        out.append(odd[i])
    out.extend(even[len(odd):])
    # Cleanup layer: compare-exchange adjacent (odd, even) position pairs.
    for i in range(1, len(out) - 1, 2):
        lo = jnp.minimum(out[i], out[i + 1])
        hi = jnp.maximum(out[i], out[i + 1])
        out[i], out[i + 1] = lo, hi
    return out


def _get_inters_earth_kernel(ro_ref, rd_ref, tsorted_ref, tnear_ref, tfar_ref,
                             *, inters, scene_scale, chunks):
    earth_rad = jnp.float32(EARTH_RAD_M * scene_scale)
    earth_full = jnp.float32(EARTH_FULL_M * scene_scale)

    L = inters + 1
    half = int(inters * 2.0 / 3.0)          # same int() truncation as the PyTorch module
    n_lin = inters - half + 2

    # One (8, 128) ray slab per iteration: each quantity is exactly one full vreg, so the
    # live set during the merge stays well under 64 vregs (no spills) while the outer
    # pallas block stays large (few grid steps / little per-step overhead).
    @pl.loop(0, chunks)
    def _(c):
        ox = ro_ref[0, c, :, :]
        oy = ro_ref[1, c, :, :]
        oz = ro_ref[2, c, :, :] + earth_rad          # global_center = (0, 0, -earth_rad) folded in
        dx = rd_ref[0, c, :, :]
        dy = rd_ref[1, c, :, :]
        dz = rd_ref[2, c, :, :]

        # ---- get_near_far (all full (8, 128) slabs) ----
        a = dx * dx + dy * dy + dz * dz
        b = 2.0 * (ox * dx + oy * dy + oz * dz)
        cc = ox * ox + oy * oy + oz * oz
        b2 = b * b
        four_a = 4.0 * a                               # hoisted, shared by both discriminants
        delta_near = jnp.sqrt(b2 - four_a * (cc - earth_full * earth_full))
        delta_far = jnp.sqrt(b2 - four_a * (cc - earth_rad * earth_rad))

        inv_2a = _fast_recip(2.0 * a)                  # shared by both quadratic roots
        neg_b = -b
        t_near = (neg_b - delta_near) * inv_2a * 0.9
        t_far = (neg_b - delta_far) * inv_2a * 1.1

        inv_tnear = _fast_recip(t_near)
        inv_tfar = _fast_recip(t_far)

        # ---- sample rows: disparity-spaced head + linear tail (each run is monotone) ----
        head = []
        for k in range(half):
            s = float(k) / float(inters)
            head.append(_fast_recip(inv_tnear * (1.0 - s) + inv_tfar * s))
        linear_start = head[-1]
        tail = []
        for k in range(half, L):                       # cat index k -> linear index k-half+1
            lv = float(k - half + 1) / float(n_lin - 1)
            tail.append(linear_start * (1.0 - lv) + t_far * lv)

        # torch.sort(dim=-1) replacement: odd-even merge of the two sorted runs.
        rows = _oddeven_merge_rows(head, tail)

        for j in range(L):                             # dense full-vreg stores
            tsorted_ref[j, c, :, :] = rows[j]
        tnear_ref[0, c, :, :] = t_near
        tfar_ref[0, c, :, :] = t_far


def get_inters_earth(rays_o, rays_d, *, inters, scene_scale, tile_n=8192):
    """rays_o, rays_d: (N, 3) -> (t_inters (N, inters, 2), t_near (N, 1), t_far (N, 1))."""
    if inters < 2:
        raise ValueError("inters must be >= 2 (same implicit assumption as the PyTorch module)")
    rays_o = rays_o.astype(jnp.float32)
    rays_d = rays_d.astype(jnp.float32)
    N = rays_o.shape[0]
    L = inters + 1

    # Block lane-width: as large as reasonable (single-TC v5e/v6e want few grid steps). If a
    # single block would cover everything but there is enough work, split into ~2 blocks so
    # v7x's two TensorCores both get a share of the "parallel" grid axis.
    tn = max(_CHUNK_LANES, (int(tile_n) // _CHUNK_LANES) * _CHUNK_LANES)
    tn = min(tn, pl.cdiv(N, _CHUNK_LANES) * _CHUNK_LANES)
    if pl.cdiv(N, tn) == 1 and N > _CHUNK_LANES:
        tn = pl.cdiv(pl.cdiv(N, _CHUNK_LANES), 2) * _CHUNK_LANES

    n_pad = pl.cdiv(N, tn) * tn
    if n_pad != N:
        rays_o = jnp.pad(rays_o, ((0, n_pad - N), (0, 0)), mode="edge")
        rays_d = jnp.pad(rays_d, ((0, n_pad - N), (0, 0)), mode="edge")

    # Sublane+lane-dense layout: (3, B8, 8, 128) — xyz leading, rays split over
    # (chunk, sublane, lane) so every per-quantity slab is a full (8, 128) vreg.
    B8 = n_pad // _CHUNK_LANES
    ro_t = rays_o.T.reshape(3, B8, 8, 128)
    rd_t = rays_d.T.reshape(3, B8, 8, 128)

    blk = tn // _CHUNK_LANES                  # (8,128)-chunks per grid step
    grid = (n_pad // tn,)

    kernel = functools.partial(_get_inters_earth_kernel,
                               inters=inters, scene_scale=scene_scale, chunks=blk)

    t_sorted_t, t_near_t, t_far_t = pl.pallas_call(
        kernel,
        out_shape=(jax.ShapeDtypeStruct((L, B8, 8, 128), jnp.float32),
                   jax.ShapeDtypeStruct((1, B8, 8, 128), jnp.float32),
                   jax.ShapeDtypeStruct((1, B8, 8, 128), jnp.float32)),
        grid_spec=pltpu.PrefetchScalarGridSpec(
            num_scalar_prefetch=0,
            grid=grid,
            in_specs=[pl.BlockSpec((3, blk, 8, 128), lambda i: (0, i, 0, 0)),
                      pl.BlockSpec((3, blk, 8, 128), lambda i: (0, i, 0, 0))],
            out_specs=[pl.BlockSpec((L, blk, 8, 128), lambda i: (0, i, 0, 0)),
                       pl.BlockSpec((1, blk, 8, 128), lambda i: (0, i, 0, 0)),
                       pl.BlockSpec((1, blk, 8, 128), lambda i: (0, i, 0, 0))]),
        compiler_params=pltpu.CompilerParams(dimension_semantics=("parallel",)),
    )(ro_t, rd_t)

    # Layout plumbing back to the module's (N, inters, 2) / (N, 1) contract.
    t_sorted = jnp.transpose(t_sorted_t, (1, 2, 3, 0)).reshape(n_pad, L)[:N]
    t_near = t_near_t.reshape(n_pad, 1)[:N]
    t_far = t_far_t.reshape(n_pad, 1)[:N]
    t_inters = jnp.stack([t_sorted[:, :-1], t_sorted[:, 1:]], axis=-1)
    return t_inters, t_near, t_far


def ref_get_inters_earth(rays_o, rays_d, inters, scene_scale):
    """Plain-JAX reference mirroring the PyTorch module."""
    center = jnp.array([[0.0, 0.0, -EARTH_RAD_M * scene_scale]], jnp.float32)
    earth_rad = jnp.float32(EARTH_RAD_M * scene_scale)
    earth_full = jnp.float32(EARTH_FULL_M * scene_scale)
    a = jnp.sum(rays_d ** 2, -1)
    b = 2.0 * jnp.sum((rays_o - center) * rays_d, -1)
    cc = jnp.sum((rays_o - center) ** 2, -1)
    c_near = cc - earth_full ** 2
    c_far = cc - earth_rad ** 2
    d_near = (-b - jnp.sqrt(b ** 2 - 4.0 * a * c_near)) / (2.0 * a)
    d_far = (-b - jnp.sqrt(b ** 2 - 4.0 * a * c_far)) / (2.0 * a)
    t_near = (d_near * 0.9)[:, None]
    t_far = (d_far * 1.1)[:, None]
    s_vals = jnp.linspace(0.0, 1.0, inters + 1, dtype=jnp.float32)[None]
    t_vals = 1.0 / ((1.0 / t_near) * (1.0 - s_vals) + (1.0 / t_far) * s_vals)
    half = int(inters * 2.0 / 3.0)
    t_vals_half = t_vals[:, :half]
    linear_start = t_vals_half[:, -1:]
    linear_vals = jnp.linspace(0.0, 1.0, inters - half + 2, dtype=jnp.float32)[None]
    linear_half = linear_start * (1.0 - linear_vals) + t_far * linear_vals
    t_tol = jnp.sort(jnp.concatenate([t_vals_half, linear_half[:, 1:]], -1), axis=-1)
    t_inters = jnp.stack([t_tol[:, :-1], t_tol[:, 1:]], -1)
    return t_inters, t_near, t_far


if __name__ == "__main__":
    inters = 8
    scene_scale = 1e-6
    N = 256

    key = jax.random.PRNGKey(0)
    k1, k2 = jax.random.split(key)

    # Ray origins ~100 km above the earth surface (scaled units), rays pointing roughly down (-z).
    rays_o = (jnp.array([0.0, 0.0, 100000.0 * scene_scale], jnp.float32)
              + (1000.0 * scene_scale) * jax.random.normal(k1, (N, 3), jnp.float32))
    dirs = jnp.concatenate([0.1 * jax.random.normal(k2, (N, 2), jnp.float32),
                            -jnp.ones((N, 1), jnp.float32)], axis=-1)
    rays_d = dirs / jnp.linalg.norm(dirs, axis=-1, keepdims=True)

    t_inters, t_near, t_far = get_inters_earth(rays_o, rays_d,
                                               inters=inters, scene_scale=scene_scale)
    jax.block_until_ready((t_inters, t_near, t_far))

    ri, rn, rf = ref_get_inters_earth(rays_o, rays_d, inters, scene_scale)
    assert t_inters.shape == (N, inters, 2) and t_near.shape == (N, 1) and t_far.shape == (N, 1)
    assert jnp.allclose(t_near, rn, rtol=1e-4, atol=1e-6)
    assert jnp.allclose(t_far, rf, rtol=1e-4, atol=1e-6)
    assert jnp.allclose(t_inters, ri, rtol=1e-4, atol=1e-6)

    print("KERNEL_OK")
</pallas_src>

<mosaic_0001>
module attributes {stable_mosaic.version = 11 : i64} {
  func.func @_get_inters_earth_kernel(%arg0: i32, %arg1: memref<3x1x8x128xf32, #tpu.memory_space<vmem>>, %arg2: memref<3x1x8x128xf32, #tpu.memory_space<vmem>>, %arg3: memref<9x1x8x128xf32, #tpu.memory_space<vmem>>, %arg4: memref<1x1x8x128xf32, #tpu.memory_space<vmem>>, %arg5: memref<1x1x8x128xf32, #tpu.memory_space<vmem>>) attributes {dimension_semantics = [#tpu.dimension_semantics<parallel>], iteration_bounds = array<i64: 1>, scalar_prefetch = 0 : i64, scratch_operands = 0 : i64, tpu.core_type = #tpu.core_type<tc>, window_params = [{transform_indices = @transform_0, window_bounds = array<i64: 3, 1, 8, 128>}, {transform_indices = @transform_1, window_bounds = array<i64: 3, 1, 8, 128>}, {transform_indices = @transform_2, window_bounds = array<i64: 9, 1, 8, 128>}, {transform_indices = @transform_3, window_bounds = array<i64: 1, 1, 8, 128>}, {transform_indices = @transform_4, window_bounds = array<i64: 1, 1, 8, 128>}]} {
    %cst = arith.constant 6.37101078 : f32
    %cst_0 = arith.constant 6.37126112 : f32
    %c0_i32 = arith.constant 0 : i32
    %c1_i32 = arith.constant 1 : i32
    %0 = arith.muli %c0_i32, %c1_i32 : i32
    %c0_i32_1 = arith.constant 0 : i32
    %1 = arith.addi %c0_i32_1, %0 : i32
    %c0 = arith.constant 0 : index
    %2 = arith.index_cast %1 : i32 to index
    %c0_2 = arith.constant 0 : index
    %c0_3 = arith.constant 0 : index
    %3 = vector.load %arg1[%c0, %2, %c0_2, %c0_3] : memref<3x1x8x128xf32, #tpu.memory_space<vmem>>, vector<1x1x8x128xf32>
    %4 = vector.shape_cast %3 : vector<1x1x8x128xf32> to vector<8x128xf32>
    %c1 = arith.constant 1 : index
    %5 = arith.index_cast %1 : i32 to index
    %c0_4 = arith.constant 0 : index
    %c0_5 = arith.constant 0 : index
    %6 = vector.load %arg1[%c1, %5, %c0_4, %c0_5] : memref<3x1x8x128xf32, #tpu.memory_space<vmem>>, vector<1x1x8x128xf32>
    %7 = vector.shape_cast %6 : vector<1x1x8x128xf32> to vector<8x128xf32>
    %c2 = arith.constant 2 : index
    %8 = arith.index_cast %1 : i32 to index
    %c0_6 = arith.constant 0 : index
    %c0_7 = arith.constant 0 : index
    %9 = vector.load %arg1[%c2, %8, %c0_6, %c0_7] : memref<3x1x8x128xf32, #tpu.memory_space<vmem>>, vector<1x1x8x128xf32>
    %10 = vector.shape_cast %9 : vector<1x1x8x128xf32> to vector<8x128xf32>
    %11 = vector.broadcast %cst : f32 to vector<8x128xf32>
    %12 = arith.addf %10, %11 : vector<8x128xf32>
    %c0_8 = arith.constant 0 : index
    %13 = arith.index_cast %1 : i32 to index
    %c0_9 = arith.constant 0 : index
    %c0_10 = arith.constant 0 : index
    %14 = vector.load %arg2[%c0_8, %13, %c0_9, %c0_10] : memref<3x1x8x128xf32, #tpu.memory_space<vmem>>, vector<1x1x8x128xf32>
    %15 = vector.shape_cast %14 : vector<1x1x8x128xf32> to vector<8x128xf32>
    %c1_11 = arith.constant 1 : index
    %16 = arith.index_cast %1 : i32 to index
    %c0_12 = arith.constant 0 : index
    %c0_13 = arith.constant 0 : index
    %17 = vector.load %arg2[%c1_11, %16, %c0_12, %c0_13] : memref<3x1x8x128xf32, #tpu.memory_space<vmem>>, vector<1x1x8x128xf32>
    %18 = vector.shape_cast %17 : vector<1x1x8x128xf32> to vector<8x128xf32>
    %c2_14 = arith.constant 2 : index
    %19 = arith.index_cast %1 : i32 to index
    %c0_15 = arith.constant 0 : index
    %c0_16 = arith.constant 0 : index
    %20 = vector.load %arg2[%c2_14, %19, %c0_15, %c0_16] : memref<3x1x8x128xf32, #tpu.memory_space<vmem>>, vector<1x1x8x128xf32>
    %21 = vector.shape_cast %20 : vector<1x1x8x128xf32> to vector<8x128xf32>
    %22 = arith.mulf %15, %15 : vector<8x128xf32>
    %23 = arith.mulf %18, %18 : vector<8x128xf32>
    %24 = arith.addf %22, %23 : vector<8x128xf32>
    %25 = arith.mulf %21, %21 : vector<8x128xf32>
    %26 = arith.addf %24, %25 : vector<8x128xf32>
    %27 = arith.mulf %4, %15 : vector<8x128xf32>
    %28 = arith.mulf %7, %18 : vector<8x128xf32>
    %29 = arith.addf %27, %28 : vector<8x128xf32>
    %30 = arith.mulf %12, %21 : vector<8x128xf32>
    %31 = arith.addf %29, %30 : vector<8x128xf32>
    %cst_17 = arith.constant 2.000000e+00 : f32
    %32 = vector.broadcast %cst_17 : f32 to vector<8x128xf32>
    %33 = arith.mulf %32, %31 : vector<8x128xf32>
    %34 = arith.mulf %4, %4 : vector<8x128xf32>
    %35 = arith.mulf %7, %7 : vector<8x128xf32>
    %36 = arith.addf %34, %35 : vector<8x128xf32>
    %37 = arith.mulf %12, %12 : vector<8x128xf32>
    %38 = arith.addf %36, %37 : vector<8x128xf32>
    %39 = arith.mulf %33, %33 : vector<8x128xf32>
    %cst_18 = arith.constant 4.000000e+00 : f32
    %40 = vector.broadcast %cst_18 : f32 to vector<8x128xf32>
    %41 = arith.mulf %40, %26 : vector<8x128xf32>
    %42 = arith.mulf %cst_0, %cst_0 : f32
    %43 = vector.broadcast %42 : f32 to vector<8x128xf32>
    %44 = arith.subf %38, %43 : vector<8x128xf32>
    %45 = arith.mulf %41, %44 : vector<8x128xf32>
    %46 = arith.subf %39, %45 : vector<8x128xf32>
    %47 = math.sqrt %46 : vector<8x128xf32>
    %48 = arith.mulf %cst, %cst : f32
    %49 = vector.broadcast %48 : f32 to vector<8x128xf32>
    %50 = arith.subf %38, %49 : vector<8x128xf32>
    %51 = arith.mulf %41, %50 : vector<8x128xf32>
    %52 = arith.subf %39, %51 : vector<8x128xf32>
    %53 = math.sqrt %52 : vector<8x128xf32>
    %cst_19 = arith.constant 2.000000e+00 : f32
    %54 = vector.broadcast %cst_19 : f32 to vector<8x128xf32>
    %55 = arith.mulf %54, %26 : vector<8x128xf32>
    %56 = tpu.reciprocal %55 {approx = true} : vector<8x128xf32> -> vector<8x128xf32>
    %57 = arith.mulf %55, %56 : vector<8x128xf32>
    %cst_20 = arith.constant 2.000000e+00 : f32
    %58 = vector.broadcast %cst_20 : f32 to vector<8x128xf32>
    %59 = arith.subf %58, %57 : vector<8x128xf32>
    %60 = arith.mulf %56, %59 : vector<8x128xf32>
    %cst_21 = arith.constant 0.000000e+00 : f32
    %61 = vector.broadcast %cst_21 : f32 to vector<8x128xf32>
    %62 = arith.subf %61, %33 : vector<8x128xf32>
    %63 = arith.subf %62, %47 : vector<8x128xf32>
    %64 = arith.mulf %63, %60 : vector<8x128xf32>
    %cst_22 = arith.constant 0.899999976 : f32
    %65 = vector.broadcast %cst_22 : f32 to vector<8x128xf32>
    %66 = arith.mulf %64, %65 : vector<8x128xf32>
    %67 = arith.subf %62, %53 : vector<8x128xf32>
    %68 = arith.mulf %67, %60 : vector<8x128xf32>
    %cst_23 = arith.constant 1.100000e+00 : f32
    %69 = vector.broadcast %cst_23 : f32 to vector<8x128xf32>
    %70 = arith.mulf %68, %69 : vector<8x128xf32>
    %71 = tpu.reciprocal %66 {approx = true} : vector<8x128xf32> -> vector<8x128xf32>
    %72 = arith.mulf %66, %71 : vector<8x128xf32>
    %cst_24 = arith.constant 2.000000e+00 : f32
    %73 = vector.broadcast %cst_24 : f32 to vector<8x128xf32>
    %74 = arith.subf %73, %72 : vector<8x128xf32>
    %75 = arith.mulf %71, %74 : vector<8x128xf32>
    %76 = tpu.reciprocal %70 {approx = true} : vector<8x128xf32> -> vector<8x128xf32>
    %77 = arith.mulf %70, %76 : vector<8x128xf32>
    %cst_25 = arith.constant 2.000000e+00 : f32
    %78 = vector.broadcast %cst_25 : f32 to vector<8x128xf32>
    %79 = arith.subf %78, %77 : vector<8x128xf32>
    %80 = arith.mulf %76, %79 : vector<8x128xf32>
    %cst_26 = arith.constant 1.000000e+00 : f32
    %81 = vector.broadcast %cst_26 : f32 to vector<8x128xf32>
    %82 = arith.mulf %75, %81 : vector<8x128xf32>
    %cst_27 = arith.constant 0.000000e+00 : f32
    %83 = vector.broadcast %cst_27 : f32 to vector<8x128xf32>
    %84 = arith.mulf %80, %83 : vector<8x128xf32>
    %85 = arith.addf %82, %84 : vector<8x128xf32>
    %86 = tpu.reciprocal %85 {approx = true} : vector<8x128xf32> -> vector<8x128xf32>
    %87 = arith.mulf %85, %86 : vector<8x128xf32>
    %cst_28 = arith.constant 2.000000e+00 : f32
    %88 = vector.broadcast %cst_28 : f32 to vector<8x128xf32>
    %89 = arith.subf %88, %87 : vector<8x128xf32>
    %90 = arith.mulf %86, %89 : vector<8x128xf32>
    %cst_29 = arith.constant 8.750000e-01 : f32
    %91 = vector.broadcast %cst_29 : f32 to vector<8x128xf32>
    %92 = arith.mulf %75, %91 : vector<8x128xf32>
    %cst_30 = arith.constant 1.250000e-01 : f32
    %93 = vector.broadcast %cst_30 : f32 to vector<8x128xf32>
    %94 = arith.mulf %80, %93 : vector<8x128xf32>
    %95 = arith.addf %92, %94 : vector<8x128xf32>
    %96 = tpu.reciprocal %95 {approx = true} : vector<8x128xf32> -> vector<8x128xf32>
    %97 = arith.mulf %95, %96 : vector<8x128xf32>
    %cst_31 = arith.constant 2.000000e+00 : f32
    %98 = vector.broadcast %cst_31 : f32 to vector<8x128xf32>
    %99 = arith.subf %98, %97 : vector<8x128xf32>
    %100 = arith.mulf %96, %99 : vector<8x128xf32>
    %cst_32 = arith.constant 7.500000e-01 : f32
    %101 = vector.broadcast %cst_32 : f32 to vector<8x128xf32>
    %102 = arith.mulf %75, %101 : vector<8x128xf32>
    %cst_33 = arith.constant 2.500000e-01 : f32
    %103 = vector.broadcast %cst_33 : f32 to vector<8x128xf32>
    %104 = arith.mulf %80, %103 : vector<8x128xf32>
    %105 = arith.addf %102, %104 : vector<8x128xf32>
    %106 = tpu.reciprocal %105 {approx = true} : vector<8x128xf32> -> vector<8x128xf32>
    %107 = arith.mulf %105, %106 : vector<8x128xf32>
    %cst_34 = arith.constant 2.000000e+00 : f32
    %108 = vector.broadcast %cst_34 : f32 to vector<8x128xf32>
    %109 = arith.subf %108, %107 : vector<8x128xf32>
    %110 = arith.mulf %106, %109 : vector<8x128xf32>
    %cst_35 = arith.constant 6.250000e-01 : f32
    %111 = vector.broadcast %cst_35 : f32 to vector<8x128xf32>
    %112 = arith.mulf %75, %111 : vector<8x128xf32>
    %cst_36 = arith.constant 3.750000e-01 : f32
    %113 = vector.broadcast %cst_36 : f32 to vector<8x128xf32>
    %114 = arith.mulf %80, %113 : vector<8x128xf32>
    %115 = arith.addf %112, %114 : vector<8x128xf32>
    %116 = tpu.reciprocal %115 {approx = true} : vector<8x128xf32> -> vector<8x128xf32>
    %117 = arith.mulf %115, %116 : vector<8x128xf32>
    %cst_37 = arith.constant 2.000000e+00 : f32
    %118 = vector.broadcast %cst_37 : f32 to vector<8x128xf32>
    %119 = arith.subf %118, %117 : vector<8x128xf32>
    %120 = arith.mulf %116, %119 : vector<8x128xf32>
    %cst_38 = arith.constant 5.000000e-01 : f32
    %121 = vector.broadcast %cst_38 : f32 to vector<8x128xf32>
    %122 = arith.mulf %75, %121 : vector<8x128xf32>
    %cst_39 = arith.constant 5.000000e-01 : f32
    %123 = vector.broadcast %cst_39 : f32 to vector<8x128xf32>
    %124 = arith.mulf %80, %123 : vector<8x128xf32>
    %125 = arith.addf %122, %124 : vector<8x128xf32>
    %126 = tpu.reciprocal %125 {approx = true} : vector<8x128xf32> -> vector<8x128xf32>
    %127 = arith.mulf %125, %126 : vector<8x128xf32>
    %cst_40 = arith.constant 2.000000e+00 : f32
    %128 = vector.broadcast %cst_40 : f32 to vector<8x128xf32>
    %129 = arith.subf %128, %127 : vector<8x128xf32>
    %130 = arith.mulf %126, %129 : vector<8x128xf32>
    %cst_41 = arith.constant 7.500000e-01 : f32
    %131 = vector.broadcast %cst_41 : f32 to vector<8x128xf32>
    %132 = arith.mulf %130, %131 : vector<8x128xf32>
    %cst_42 = arith.constant 2.500000e-01 : f32
    %133 = vector.broadcast %cst_42 : f32 to vector<8x128xf32>
    %134 = arith.mulf %70, %133 : vector<8x128xf32>
    %135 = arith.addf %132, %134 : vector<8x128xf32>
    %cst_43 = arith.constant 5.000000e-01 : f32
    %136 = vector.broadcast %cst_43 : f32 to vector<8x128xf32>
    %137 = arith.mulf %130, %136 : vector<8x128xf32>
    %cst_44 = arith.constant 5.000000e-01 : f32
    %138 = vector.broadcast %cst_44 : f32 to vector<8x128xf32>
    %139 = arith.mulf %70, %138 : vector<8x128xf32>
    %140 = arith.addf %137, %139 : vector<8x128xf32>
    %cst_45 = arith.constant 2.500000e-01 : f32
    %141 = vector.broadcast %cst_45 : f32 to vector<8x128xf32>
    %142 = arith.mulf %130, %141 : vector<8x128xf32>
    %cst_46 = arith.constant 7.500000e-01 : f32
    %143 = vector.broadcast %cst_46 : f32 to vector<8x128xf32>
    %144 = arith.mulf %70, %143 : vector<8x128xf32>
    %145 = arith.addf %142, %144 : vector<8x128xf32>
    %cst_47 = arith.constant 0.000000e+00 : f32
    %146 = vector.broadcast %cst_47 : f32 to vector<8x128xf32>
    %147 = arith.mulf %130, %146 : vector<8x128xf32>
    %cst_48 = arith.constant 1.000000e+00 : f32
    %148 = vector.broadcast %cst_48 : f32 to vector<8x128xf32>
    %149 = arith.mulf %70, %148 : vector<8x128xf32>
    %150 = arith.addf %147, %149 : vector<8x128xf32>
    %151 = arith.minimumf %90, %135 : vector<8x128xf32>
    %152 = arith.maximumf %90, %135 : vector<8x128xf32>
    %153 = arith.minimumf %130, %152 : vector<8x128xf32>
    %154 = arith.maximumf %130, %152 : vector<8x128xf32>
    %155 = arith.minimumf %110, %145 : vector<8x128xf32>
    %156 = arith.maximumf %110, %145 : vector<8x128xf32>
    %157 = arith.minimumf %155, %153 : vector<8x128xf32>
    %158 = arith.maximumf %155, %153 : vector<8x128xf32>
    %159 = arith.minimumf %156, %154 : vector<8x128xf32>
    %160 = arith.maximumf %156, %154 : vector<8x128xf32>
    %161 = arith.minimumf %100, %140 : vector<8x128xf32>
    %162 = arith.maximumf %100, %140 : vector<8x128xf32>
    %163 = arith.minimumf %120, %150 : vector<8x128xf32>
    %164 = arith.maximumf %120, %150 : vector<8x128xf32>
    %165 = arith.minimumf %163, %162 : vector<8x128xf32>
    %166 = arith.maximumf %163, %162 : vector<8x128xf32>
    %167 = arith.minimumf %161, %157 : vector<8x128xf32>
    %168 = arith.maximumf %161, %157 : vector<8x128xf32>
    %169 = arith.minimumf %165, %158 : vector<8x128xf32>
    %170 = arith.maximumf %165, %158 : vector<8x128xf32>
    %171 = arith.minimumf %166, %159 : vector<8x128xf32>
    %172 = arith.maximumf %166, %159 : vector<8x128xf32>
    %173 = arith.minimumf %164, %160 : vector<8x128xf32>
    %174 = arith.maximumf %164, %160 : vector<8x128xf32>
    %c0_49 = arith.constant 0 : index
    %175 = arith.index_cast %1 : i32 to index
    %c0_50 = arith.constant 0 : index
    %c0_51 = arith.constant 0 : index
    %176 = vector.load %arg3[%c0_49, %175, %c0_50, %c0_51] : memref<9x1x8x128xf32, #tpu.memory_space<vmem>>, vector<1x1x8x128xf32>
    %177 = vector.shape_cast %176 : vector<1x1x8x128xf32> to vector<8x128xf32>
    %178 = vector.shape_cast %151 : vector<8x128xf32> to vector<1x1x8x128xf32>
    tpu.vector_store %arg3[%c0_49, %175, %c0_50, %c0_51], %178 {strides = array<i32>} : memref<9x1x8x128xf32, #tpu.memory_space<vmem>>, vector<1x1x8x128xf32>,
    %c1_52 = arith.constant 1 : index
    %179 = arith.index_cast %1 : i32 to index
    %c0_53 = arith.constant 0 : index
    %c0_54 = arith.constant 0 : index
    %180 = vector.load %arg3[%c1_52, %179, %c0_53, %c0_54] : memref<9x1x8x128xf32, #tpu.memory_space<vmem>>, vector<1x1x8x128xf32>
    %181 = vector.shape_cast %180 : vector<1x1x8x128xf32> to vector<8x128xf32>
    %182 = vector.shape_cast %167 : vector<8x128xf32> to vector<1x1x8x128xf32>
    tpu.vector_store %arg3[%c1_52, %179, %c0_53, %c0_54], %182 {strides = array<i32>} : memref<9x1x8x128xf32, #tpu.memory_space<vmem>>, vector<1x1x8x128xf32>,
    %c2_55 = arith.constant 2 : index
    %183 = arith.index_cast %1 : i32 to index
    %c0_56 = arith.constant 0 : index
    %c0_57 = arith.constant 0 : index
    %184 = vector.load %arg3[%c2_55, %183, %c0_56, %c0_57] : memref<9x1x8x128xf32, #tpu.memory_space<vmem>>, vector<1x1x8x128xf32>
    %185 = vector.shape_cast %184 : vector<1x1x8x128xf32> to vector<8x128xf32>
    %186 = vector.shape_cast %168 : vector<8x128xf32> to vector<1x1x8x128xf32>
    tpu.vector_store %arg3[%c2_55, %183, %c0_56, %c0_57], %186 {strides = array<i32>} : memref<9x1x8x128xf32, #tpu.memory_space<vmem>>, vector<1x1x8x128xf32>,
    %c3 = arith.constant 3 : index
    %187 = arith.index_cast %1 : i32 to index
    %c0_58 = arith.constant 0 : index
    %c0_59 = arith.constant 0 : index
    %188 = vector.load %arg3[%c3, %187, %c0_58, %c0_59] : memref<9x1x8x128xf32, #tpu.memory_space<vmem>>, vector<1x1x8x128xf32>
    %189 = vector.shape_cast %188 : vector<1x1x8x128xf32> to vector<8x128xf32>
    %190 = vector.shape_cast %169 : vector<8x128xf32> to vector<1x1x8x128xf32>
    tpu.vector_store %arg3[%c3, %187, %c0_58, %c0_59], %190 {strides = array<i32>} : memref<9x1x8x128xf32, #tpu.memory_space<vmem>>, vector<1x1x8x128xf32>,
    %c4 = arith.constant 4 : index
    %191 = arith.index_cast %1 : i32 to index
    %c0_60 = arith.constant 0 : index
    %c0_61 = arith.constant 0 : index
    %192 = vector.load %arg3[%c4, %191, %c0_60, %c0_61] : memref<9x1x8x128xf32, #tpu.memory_space<vmem>>, vector<1x1x8x128xf32>
    %193 = vector.shape_cast %192 : vector<1x1x8x128xf32> to vector<8x128xf32>
    %194 = vector.shape_cast %170 : vector<8x128xf32> to vector<1x1x8x128xf32>
    tpu.vector_store %arg3[%c4, %191, %c0_60, %c0_61], %194 {strides = array<i32>} : memref<9x1x8x128xf32, #tpu.memory_space<vmem>>, vector<1x1x8x128xf32>,
    %c5 = arith.constant 5 : index
    %195 = arith.index_cast %1 : i32 to index
    %c0_62 = arith.constant 0 : index
    %c0_63 = arith.constant 0 : index
    %196 = vector.load %arg3[%c5, %195, %c0_62, %c0_63] : memref<9x1x8x128xf32, #tpu.memory_space<vmem>>, vector<1x1x8x128xf32>
    %197 = vector.shape_cast %196 : vector<1x1x8x128xf32> to vector<8x128xf32>
    %198 = vector.shape_cast %171 : vector<8x128xf32> to vector<1x1x8x128xf32>
    tpu.vector_store %arg3[%c5, %195, %c0_62, %c0_63], %198 {strides = array<i32>} : memref<9x1x8x128xf32, #tpu.memory_space<vmem>>, vector<1x1x8x128xf32>,
    %c6 = arith.constant 6 : index
    %199 = arith.index_cast %1 : i32 to index
    %c0_64 = arith.constant 0 : index
    %c0_65 = arith.constant 0 : index
    %200 = vector.load %arg3[%c6, %199, %c0_64, %c0_65] : memref<9x1x8x128xf32, #tpu.memory_space<vmem>>, vector<1x1x8x128xf32>
    %201 = vector.shape_cast %200 : vector<1x1x8x128xf32> to vector<8x128xf32>
    %202 = vector.shape_cast %172 : vector<8x128xf32> to vector<1x1x8x128xf32>
    tpu.vector_store %arg3[%c6, %199, %c0_64, %c0_65], %202 {strides = array<i32>} : memref<9x1x8x128xf32, #tpu.memory_space<vmem>>, vector<1x1x8x128xf32>,
    %c7 = arith.constant 7 : index
    %203 = arith.index_cast %1 : i32 to index
    %c0_66 = arith.constant 0 : index
    %c0_67 = arith.constant 0 : index
    %204 = vector.load %arg3[%c7, %203, %c0_66, %c0_67] : memref<9x1x8x128xf32, #tpu.memory_space<vmem>>, vector<1x1x8x128xf32>
    %205 = vector.shape_cast %204 : vector<1x1x8x128xf32> to vector<8x128xf32>
    %206 = vector.shape_cast %173 : vector<8x128xf32> to vector<1x1x8x128xf32>
    tpu.vector_store %arg3[%c7, %203, %c0_66, %c0_67], %206 {strides = array<i32>} : memref<9x1x8x128xf32, #tpu.memory_space<vmem>>, vector<1x1x8x128xf32>,
    %c8 = arith.constant 8 : index
    %207 = arith.index_cast %1 : i32 to index
    %c0_68 = arith.constant 0 : index
    %c0_69 = arith.constant 0 : index
    %208 = vector.load %arg3[%c8, %207, %c0_68, %c0_69] : memref<9x1x8x128xf32, #tpu.memory_space<vmem>>, vector<1x1x8x128xf32>
    %209 = vector.shape_cast %208 : vector<1x1x8x128xf32> to vector<8x128xf32>
    %210 = vector.shape_cast %174 : vector<8x128xf32> to vector<1x1x8x128xf32>
    tpu.vector_store %arg3[%c8, %207, %c0_68, %c0_69], %210 {strides = array<i32>} : memref<9x1x8x128xf32, #tpu.memory_space<vmem>>, vector<1x1x8x128xf32>,
    %c0_70 = arith.constant 0 : index
    %211 = arith.index_cast %1 : i32 to index
    %c0_71 = arith.constant 0 : index
    %c0_72 = arith.constant 0 : index
    %212 = vector.load %arg4[%c0_70, %211, %c0_71, %c0_72] : memref<1x1x8x128xf32, #tpu.memory_space<vmem>>, vector<1x1x8x128xf32>
    %213 = vector.shape_cast %212 : vector<1x1x8x128xf32> to vector<8x128xf32>
    %214 = vector.shape_cast %66 : vector<8x128xf32> to vector<1x1x8x128xf32>
    tpu.vector_store %arg4[%c0_70, %211, %c0_71, %c0_72], %214 {strides = array<i32>} : memref<1x1x8x128xf32, #tpu.memory_space<vmem>>, vector<1x1x8x128xf32>,
    %c0_73 = arith.constant 0 : index
    %215 = arith.index_cast %1 : i32 to index
    %c0_74 = arith.constant 0 : index
    %c0_75 = arith.constant 0 : index
    %216 = vector.load %arg5[%c0_73, %215, %c0_74, %c0_75] : memref<1x1x8x128xf32, #tpu.memory_space<vmem>>, vector<1x1x8x128xf32>
    %217 = vector.shape_cast %216 : vector<1x1x8x128xf32> to vector<8x128xf32>
    %218 = vector.shape_cast %70 : vector<8x128xf32> to vector<1x1x8x128xf32>
    tpu.vector_store %arg5[%c0_73, %215, %c0_74, %c0_75], %218 {strides = array<i32>} : memref<1x1x8x128xf32, #tpu.memory_space<vmem>>, vector<1x1x8x128xf32>,
    %c1_i32_76 = arith.constant 1 : i32
    return
  }
  func.func @transform_0(%arg0: i32) -> (i32, i32, i32, i32) {
    %c0_i32 = arith.constant 0 : i32
    %c0_i32_0 = arith.constant 0 : i32
    %c0_i32_1 = arith.constant 0 : i32
    %c0_i32_2 = arith.constant 0 : i32
    return %c0_i32, %arg0, %c0_i32_0, %c0_i32_1 : i32, i32, i32, i32
  }
  func.func @transform_1(%arg0: i32) -> (i32, i32, i32, i32) {
    %c0_i32 = arith.constant 0 : i32
    %c0_i32_0 = arith.constant 0 : i32
    %c0_i32_1 = arith.constant 0 : i32
    %c0_i32_2 = arith.constant 0 : i32
    return %c0_i32, %arg0, %c0_i32_0, %c0_i32_1 : i32, i32, i32, i32
  }
  func.func @transform_2(%arg0: i32) -> (i32, i32, i32, i32) {
    %c0_i32 = arith.constant 0 : i32
    %c0_i32_0 = arith.constant 0 : i32
    %c0_i32_1 = arith.constant 0 : i32
    %c0_i32_2 = arith.constant 0 : i32
    return %c0_i32, %arg0, %c0_i32_0, %c0_i32_1 : i32, i32, i32, i32
  }
  func.func @transform_3(%arg0: i32) -> (i32, i32, i32, i32) {
    %c0_i32 = arith.constant 0 : i32
    %c0_i32_0 = arith.constant 0 : i32
    %c0_i32_1 = arith.constant 0 : i32
    %c0_i32_2 = arith.constant 0 : i32
    return %c0_i32, %arg0, %c0_i32_0, %c0_i32_1 : i32, i32, i32, i32
  }
  func.func @transform_4(%arg0: i32) -> (i32, i32, i32, i32) {
    %c0_i32 = arith.constant 0 : i32
    %c0_i32_0 = arith.constant 0 : i32
    %c0_i32_1 = arith.constant 0 : i32
    %c0_i32_2 = arith.constant 0 : i32
    return %c0_i32, %arg0, %c0_i32_0, %c0_i32_1 : i32, i32, i32, i32
  }
}

</mosaic_0001>

<bundles_post_ra>
// kernel: tpu_custom_call.1
= control target key start
LH: loop header
LB: loop body
LE: loop exit
PB: predicated region body
PF: predicated region fallthrough
CT: control target
= control target key end

     0   :  { %10 = vsyncpa [#allocation3], 0  ;;  %s510_s0 = inlined_call_operand.hbm [shape: f32[3,1,8,128], index: 0, kind: input, shape index: {}]   ;;  %s511_s1 = inlined_call_operand.hbm [shape: f32[3,1,8,128], index: 1, kind: input, shape index: {}]   ;;  %s512_s2 = inlined_call_operand.hbm [shape: f32[9,1,8,128], index: 2, kind: output, shape index: {0}]   ;;  %s513_s3 = inlined_call_operand.hbm [shape: f32[1,1,8,128], index: 3, kind: output, shape index: {1}]   ;;  %s514_s4 = inlined_call_operand.hbm [shape: f32[1,1,8,128], index: 4, kind: output, shape index: {2}]  }
   0x1   :  { %11 = vsyncpa [#allocation6], 0 }
   0x2   :  { %12 = vsyncpa [#allocation4], 0 }
   0x3   :  { %13 = vsyncpa [#allocation9], 0  ;;  %s393_s15 = smov [#allocation2]   ;;  %s275_s19 = scalar_lea.hbm %s510_s0, 384 }
   0x4   :  { %s19_s16 = sshll.u32 %s393_s15, 4  ;;  %p276_p0 = scmp.ne.s32.totalorder %s510_s0, %s275_s19  ;;  %s20_s16 = int_to_ptr.vmem [resolvable:$true] %s19_s16 }
   0x5   :  { %p279_p1 = scmp.lt.u32.totalorder %s275_s19, %s510_s0 }
   0x7   :  { %p281_p2 = pnand %p279_p1, %p276_p0 }
   0x9   :  { %284 = shalt.err (!%p281_p2)
}
   0xa   :  { %s285_s24 = scalar_lea.vmem %s20_s16, 384  ;;  %p290_p4 = scmp.lt.s32.totalorder %s20_s16, %s20_s16 }
   0xb   :  { %p286_p3 = scmp.ne.s32.totalorder %s20_s16, %s285_s24  ;;  %p291_p5 = scmp.lt.s32.totalorder %s285_s24, %s285_s24 }
   0xd   :  { %p292_p6 = por %p291_p5, %p290_p4 }
   0xf   :  { %p293_p7 = pnand %p292_p6, %p286_p3 }
  0x11   :  { %296 = shalt.err (!%p293_p7)
}
  0x12   :  { %s394_s25 = smov 128   ;;  %s395_s26 = smov 8  }
  0x13   :  { %25 = dma.hbm_to_vmem [thread:$0]  %s510_s0, 384, %s20_s16, [#allocation3], %s394_s25, %s394_s25, %s395_s26  }
  0x14   :  { %s396_s29 = smov [#allocation5]   ;;  %s297_s7 = scalar_lea.hbm %s511_s1, 384 }
  0x15   :  { %s31_s30 = sshll.u32 %s396_s29, 4  ;;  %p298_p8 = scmp.ne.s32.totalorder %s511_s1, %s297_s7  ;;  %s32_s30 = int_to_ptr.vmem [resolvable:$true] %s31_s30 }
  0x16   :  { %p301_p9 = scmp.lt.u32.totalorder %s297_s7, %s511_s1 }
  0x18   :  { %p303_p10 = pnand %p301_p9, %p298_p8 }
  0x1a   :  { %306 = shalt.err (!%p303_p10)
}
  0x1b   :  { %s307_s12 = scalar_lea.vmem %s32_s30, 384  ;;  %p312_p12 = scmp.lt.s32.totalorder %s32_s30, %s32_s30 }
  0x1c   :  { %p308_p11 = scmp.ne.s32.totalorder %s32_s30, %s307_s12  ;;  %p313_p13 = scmp.lt.s32.totalorder %s307_s12, %s307_s12 }
  0x1e   :  { %p314_p0 = por %p313_p13, %p312_p12 }
  0x20   :  { %p315_p1 = pnand %p314_p0, %p308_p11 }
  0x22   :  { %318 = shalt.err (!%p315_p1)
}
  0x23   :  { %37 = dma.hbm_to_vmem [thread:$0]  %s511_s1, 384, %s32_s30, [#allocation6], %s394_s25, %s394_s25, %s395_s26  }
  0x24   :  { %385 = dma.done.wait [#allocation3], 384  }
  0x25   :  { %386 = vsyncadd [#allocation3], 4294966912 }
  0x26   :  { %387 = dma.done.wait [#allocation6], 384  }
  0x27   :  { %388 = vsyncadd [#allocation6], 4294966912  ;;  %v44_v0 = vld [vmem:[#allocation2] sm:$0xff]  ;;  %v46_v1 = vld [vmem:[#allocation2 + $0x8] sm:$0xff]  ;;  %s397_s1 = smov [#allocation8]   ;;  %s398_s15 = smov [#allocation10]  }
  0x28   :  { %v48_v2 = vld [vmem:[#allocation2 + $0x10] sm:$0xff]  ;;  %v50_v4 = vld [vmem:[#allocation5] sm:$0xff]  ;;  %v52_v5 = vld [vmem:[#allocation5 + $0x8] sm:$0xff]  ;;  %v66_v7 = vmul.f32 %v44_v0, %v44_v0  ;;  %v67_v8 = vmul.f32 %v46_v1, %v46_v1  ;;  %s219_s14 = sshll.u32 %s397_s1, 4  ;;  %s229_s16 = sshll.u32 %s398_s15, 4  ;;  %s220_s14 = int_to_ptr.vmem [resolvable:$true] %s219_s14  ;;  %s457_s16 = int_to_ptr.vmem [resolvable:$true] %s229_s16 }
  0x29   :  { %v49_v3 = vadd.f32 6.371011, %v48_v2  ;;  %v54_v6 = vld [vmem:[#allocation5 + $0x10] sm:$0xff]  ;;  %v55_v9 = vmul.f32 %v50_v4, %v50_v4  ;;  %v56_v10 = vmul.f32 %v52_v5, %v52_v5  ;;  %v60_v12 = vmul.f32 %v50_v4, %v44_v0  ;;  %s319_s17 = scalar_lea.vmem %s220_s14, 128  ;;  %p324_p3 = scmp.lt.s32.totalorder %s220_s14, %s220_s14 }
  0x2a   :  { %v58_v11 = vmul.f32 %v54_v6, %v54_v6  ;;  %v61_v13 = vmul.f32 %v52_v5, %v46_v1  ;;  %v68_v15 = vadd.f32 %v67_v8, %v66_v7  ;;  %p320_p2 = scmp.ne.s32.totalorder %s220_s14, %s319_s17  ;;  %p325_p4 = scmp.lt.s32.totalorder %s319_s17, %s319_s17 }
  0x2b   :  { %v63_v14 = vmul.f32 %v54_v6, %v49_v3  ;;  %v69_v16 = vmul.f32 %v49_v3, %v49_v3  ;;  %v57_v17 = vadd.f32 %v56_v10, %v55_v9 }
  0x2c   :  { %v62_v18 = vadd.f32 %v61_v13, %v60_v12  ;;  %p326_p5 = por %p325_p4, %p324_p3 }
  0x2d   :  { %v70_v19 = vadd.f32 %v69_v16, %v68_v15  ;;  %v59_v20 = vadd.f32 %v58_v11, %v57_v17 }
  0x2e   :  { %v64_v21 = vadd.f32 %v63_v14, %v62_v18  ;;  %p327_p6 = pnand %p326_p5, %p320_p2 }
  0x2f   :  { %v246_v22 = vadd.f32 -40.592968, %v70_v19  ;;  %v247_v23 = vadd.f32 -40.58978, %v70_v19  ;;  %v72_v24 = vmul.f32 4.0, %v59_v20  ;;  %v93_v25 = vmul.f32 2.0, %v59_v20 }
  0x30   :  { %v65_v26 = vmul.f32 2.0, %v64_v21 }
  0x31   :  { %v74_v27 = vmul.f32 %v246_v22, %v72_v24  ;;  %v84_v28 = vmul.f32 %v247_v23, %v72_v24  ;;  %255 = vrcp.f32 %v93_v25 }
  0x32   :  { %v71_v29 = vmul.f32 %v65_v26, %v65_v26  ;;  %v98_v37 = vsub.f32 0.0, %v65_v26 }
  0x34   :  { %v75_v30 = vsub.f32 %v71_v29, %v74_v27  ;;  %v85_v31 = vsub.f32 %v71_v29, %v84_v28 }
  0x36   :  { %257 = vrsqrt.f32 %v75_v30  ;;  %vm78_vm0 = vcmp.eq.f32.partialorder %v75_v30, inf  ;;  %v81_v36 = vand.u32 2147483648, %v75_v30  ;;  %vm80_vm1 = vcmp.eq.f32.partialorder %v75_v30, 0.0 }
  0x37   :  { %259 = vrsqrt.f32 %v85_v31  ;;  %vm88_vm2 = vcmp.eq.f32.partialorder %v85_v31, inf  ;;  %v91_v40 = vand.u32 2147483648, %v85_v31  ;;  %vm90_vm3 = vcmp.eq.f32.partialorder %v85_v31, 0.0 }
  0x3b   :  { %v256_v32 = vpop.eup %255 }
  0x3c   :  { %v95_v33 = vmul.f32 %v256_v32, %v93_v25 }
  0x3e   :  { %v96_v34 = vsub.f32 2.0, %v95_v33 }
  0x40   :  { %v258_v35 = vpop.eup %257  ;;  %v97_v43 = vmul.f32 %v256_v32, %v96_v34 }
  0x41   :  { %v260_v38 = vpop.eup %259  ;;  %v77_v39 = vmul.f32 %v258_v35, %v75_v30 }
  0x42   :  { %v87_v41 = vmul.f32 %v260_v38, %v85_v31 }
  0x43   :  { %v79_v42 = vsel %vm78_vm0, %v75_v30, %v77_v39 }
  0x44   :  { %v82_v44 = vsel %vm80_vm1, %v81_v36, %v79_v42  ;;  %v89_v45 = vsel %vm88_vm2, %v85_v31, %v87_v41 }
  0x45   :  { %v92_v46 = vsel %vm90_vm3, %v91_v40, %v89_v45  ;;  %v99_v47 = vsub.f32 %v98_v37, %v82_v44 }
  0x46   :  { %v102_v48 = vsub.f32 %v98_v37, %v92_v46 }
  0x47   :  { %v100_v49 = vmul.f32 %v99_v47, %v97_v43 }
  0x48   :  { %v103_v50 = vmul.f32 %v102_v48, %v97_v43 }
  0x49   :  { %v101_v51 = vmul.f32 0.9, %v100_v49 }
  0x4a   :  { %v455_v52 = vmul.f32 1.1, %v103_v50 }
  0x4b   :  { %261 = vrcp.f32 %v101_v51  ;;  %199 = vst [vmem:[#allocation8] sm:$0xff] %v101_v51 }
  0x4c   :  { %200 = vst [vmem:[#allocation10] sm:$0xff] %v455_v52  ;;  %263 = vrcp.f32 %v455_v52 }
  0x4d   :  { %330 = shalt.err (!%p327_p6)
}
  0x4e   :  { %s331_s20 = scalar_lea.hbm %s513_s3, 128 }
  0x4f   :  { %p332_p7 = scmp.ne.s32.totalorder %s513_s3, %s331_s20  ;;  %p335_p8 = scmp.lt.u32.totalorder %s331_s20, %s513_s3 }
  0x51   :  { %p337_p9 = pnand %p335_p8, %p332_p7 }
  0x53   :  { %340 = shalt.err (!%p337_p9)
}
  0x54   :  { %222 = dma.vmem_to_hbm [thread:$0]  %s220_s14, 128, %s513_s3, [#allocation9]  }
  0x55   :  { %s341_s29 = scalar_lea.vmem %s457_s16, 128  ;;  %p346_p11 = scmp.lt.s32.totalorder %s457_s16, %s457_s16 }
  0x56   :  { %p342_p10 = scmp.ne.s32.totalorder %s457_s16, %s341_s29  ;;  %p347_p12 = scmp.lt.s32.totalorder %s341_s29, %s341_s29 }
  0x58   :  { %p348_p13 = por %p347_p12, %p346_p11 }
  0x5a   :  { %p349_p0 = pnand %p348_p13, %p342_p10 }
  0x5c   :  { %352 = shalt.err (!%p349_p0)
}
  0x5d   :  { %s353_s6 = scalar_lea.hbm %s514_s4, 128 }
  0x5e   :  { %p354_p1 = scmp.ne.s32.totalorder %s514_s4, %s353_s6  ;;  %p357_p2 = scmp.lt.u32.totalorder %s353_s6, %s514_s4 }
  0x60   :  { %p359_p3 = pnand %p357_p2, %p354_p1 }
  0x62   :  { %362 = shalt.err (!%p359_p3)
}
  0x63   :  { %232 = dma.vmem_to_hbm [thread:$0]  %s457_s16, 128, %s514_s4, [#allocation9]   ;;  %v262_v53 = vpop.eup %261  ;;  %v148_v22 = vmul.f32 0.25, %v455_v52  ;;  %v151_v27 = vmul.f32 0.5, %v455_v52  ;;  %v154_v28 = vmul.f32 0.75, %v455_v52 }
  0x64   :  { %v264_v54 = vpop.eup %263  ;;  %v106_v55 = vmul.f32 %v262_v53, %v101_v51  ;;  %s399_s4 = smov [#allocation7]  }
  0x65   :  { %v110_v56 = vmul.f32 %v264_v54, %v455_v52  ;;  %s206_s12 = sshll.u32 %s399_s4, 4  ;;  %s207_s12 = int_to_ptr.vmem [resolvable:$true] %s206_s12 }
  0x66   :  { %v107_v57 = vsub.f32 2.0, %v106_v55  ;;  %s363_s0 = scalar_lea.vmem %s207_s12, 1152  ;;  %p368_p5 = scmp.lt.s32.totalorder %s207_s12, %s207_s12 }
  0x67   :  { %v111_v58 = vsub.f32 2.0, %v110_v56  ;;  %p364_p4 = scmp.ne.s32.totalorder %s207_s12, %s363_s0  ;;  %p369_p6 = scmp.lt.s32.totalorder %s363_s0, %s363_s0 }
  0x68   :  { %v108_v59 = vmul.f32 %v262_v53, %v107_v57 }
  0x69   :  { %v112_v60 = vmul.f32 %v264_v54, %v111_v58  ;;  %p370_p7 = por %p369_p6, %p368_p5 }
  0x6a   :  { %v140_v61 = vmul.f32 0.5, %v108_v59  ;;  %v119_v62 = vmul.f32 0.875, %v108_v59  ;;  %v126_v63 = vmul.f32 0.75, %v108_v59  ;;  %v133_v0 = vmul.f32 0.625, %v108_v59 }
  0x6b   :  { %v113_v1 = vmul.f32 0.0, %v112_v60  ;;  %v141_v2 = vmul.f32 0.5, %v112_v60  ;;  %v120_v3 = vmul.f32 0.125, %v112_v60  ;;  %v127_v4 = vmul.f32 0.25, %v112_v60  ;;  %p371_p8 = pnand %p370_p7, %p364_p4 }
  0x6c   :  { %v134_v5 = vmul.f32 0.375, %v112_v60 }
  0x6d   :  { %v114_v6 = vadd.f32 %v113_v1, %v108_v59  ;;  %v142_v7 = vadd.f32 %v141_v2, %v140_v61  ;;  %v121_v8 = vadd.f32 %v120_v3, %v119_v62  ;;  %v128_v9 = vadd.f32 %v127_v4, %v126_v63 }
  0x6e   :  { %v135_v10 = vadd.f32 %v134_v5, %v133_v0 }
  0x6f   :  { %265 = vrcp.f32 %v114_v6 }
  0x70   :  { %267 = vrcp.f32 %v142_v7 }
  0x71   :  { %269 = vrcp.f32 %v121_v8 }
  0x72   :  { %271 = vrcp.f32 %v128_v9 }
  0x73   :  { %273 = vrcp.f32 %v135_v10 }
  0x79   :  { %v266_v11 = vpop.eup %265 }
  0x7a   :  { %v268_v12 = vpop.eup %267  ;;  %v116_v13 = vmul.f32 %v266_v11, %v114_v6 }
  0x7b   :  { %v270_v14 = vpop.eup %269  ;;  %v144_v15 = vmul.f32 %v268_v12, %v142_v7 }
  0x7c   :  { %v272_v16 = vpop.eup %271  ;;  %v117_v17 = vsub.f32 2.0, %v116_v13  ;;  %v123_v18 = vmul.f32 %v270_v14, %v121_v8 }
  0x7d   :  { %v274_v19 = vpop.eup %273  ;;  %v145_v20 = vsub.f32 2.0, %v144_v15  ;;  %v130_v21 = vmul.f32 %v272_v16, %v128_v9 }
  0x7e   :  { %v124_v23 = vsub.f32 2.0, %v123_v18  ;;  %v137_v24 = vmul.f32 %v274_v19, %v135_v10  ;;  %v118_v29 = vmul.f32 %v266_v11, %v117_v17 }
  0x7f   :  { %v146_v25 = vmul.f32 %v268_v12, %v145_v20  ;;  %v131_v26 = vsub.f32 2.0, %v130_v21 }
  0x80   :  { %v138_v30 = vsub.f32 2.0, %v137_v24  ;;  %v125_v35 = vmul.f32 %v270_v14, %v124_v23 }
  0x81   :  { %v147_v31 = vmul.f32 0.75, %v146_v25  ;;  %v132_v32 = vmul.f32 %v272_v16, %v131_v26  ;;  %v150_v33 = vmul.f32 0.5, %v146_v25  ;;  %v153_v34 = vmul.f32 0.25, %v146_v25 }
  0x82   :  { %v139_v36 = vmul.f32 %v274_v19, %v138_v30  ;;  %v156_v37 = vmul.f32 0.0, %v146_v25 }
  0x83   :  { %v149_v38 = vadd.f32 %v148_v22, %v147_v31  ;;  %v152_v39 = vadd.f32 %v151_v27, %v150_v33  ;;  %v155_v40 = vadd.f32 %v154_v28, %v153_v34 }
  0x84   :  { %v157_v41 = vadd.f32 %v156_v37, %v455_v52 }
  0x85   :  { %v158_v42 = vmin.f32 %v118_v29, %v149_v38  ;;  %v159_v43 = vmax.f32 %v118_v29, %v149_v38  ;;  %v162_v44 = vmin.f32 %v132_v32, %v155_v40  ;;  %v169_v45 = vmax.f32 %v125_v35, %v152_v39 }
  0x86   :  { %v170_v46 = vmin.f32 %v139_v36, %v157_v41  ;;  %v163_v47 = vmax.f32 %v132_v32, %v155_v40  ;;  %v168_v49 = vmin.f32 %v125_v35, %v152_v39  ;;  %v171_v54 = vmax.f32 %v139_v36, %v157_v41 }
  0x87   :  { %182 = vst [vmem:[#allocation7] sm:$0xff] %v158_v42  ;;  %v160_v48 = vmin.f32 %v146_v25, %v159_v43  ;;  %v161_v50 = vmax.f32 %v146_v25, %v159_v43 }
  0x88   :  { %v172_v51 = vmin.f32 %v170_v46, %v169_v45  ;;  %v173_v53 = vmax.f32 %v170_v46, %v169_v45 }
  0x89   :  { %v164_v55 = vmin.f32 %v162_v44, %v160_v48  ;;  %v165_v56 = vmax.f32 %v162_v44, %v160_v48  ;;  %v166_v57 = vmin.f32 %v163_v47, %v161_v50  ;;  %v167_v58 = vmax.f32 %v163_v47, %v161_v50 }
  0x8b   :  { %v174_v52 = vmin.f32 %v168_v49, %v164_v55  ;;  %v175_v59 = vmax.f32 %v168_v49, %v164_v55  ;;  %v176_v60 = vmin.f32 %v172_v51, %v165_v56  ;;  %v177_v61 = vmax.f32 %v172_v51, %v165_v56 }
  0x8c   :  { %v178_v62 = vmin.f32 %v173_v53, %v166_v57  ;;  %v179_v63 = vmax.f32 %v173_v53, %v166_v57  ;;  %v180_v0 = vmin.f32 %v171_v54, %v167_v58  ;;  %v181_v1 = vmax.f32 %v171_v54, %v167_v58 }
  0x8d   :  { %184 = vst [vmem:[#allocation7 + $0x8] sm:$0xff] %v174_v52  ;;  %186 = vst [vmem:[#allocation7 + $0x10] sm:$0xff] %v175_v59 }
  0x8e   :  { %188 = vst [vmem:[#allocation7 + $0x18] sm:$0xff] %v176_v60  ;;  %190 = vst [vmem:[#allocation7 + $0x20] sm:$0xff] %v177_v61 }
  0x8f   :  { %192 = vst [vmem:[#allocation7 + $0x28] sm:$0xff] %v178_v62  ;;  %194 = vst [vmem:[#allocation7 + $0x30] sm:$0xff] %v179_v63 }
  0x90   :  { %196 = vst [vmem:[#allocation7 + $0x38] sm:$0xff] %v180_v0  ;;  %198 = vst [vmem:[#allocation7 + $0x40] sm:$0xff] %v181_v1 }
  0x91   :  { %374 = shalt.err (!%p371_p8)
}
  0x92   :  { %s375_s14 = scalar_lea.hbm %s512_s2, 1152 }
  0x93   :  { %p376_p9 = scmp.ne.s32.totalorder %s512_s2, %s375_s14  ;;  %p379_p10 = scmp.lt.u32.totalorder %s375_s14, %s512_s2 }
  0x95   :  { %p381_p11 = pnand %p379_p10, %p376_p9 }
  0x97   :  { %384 = shalt.err (!%p381_p11)
}
  0x98   :  { %212 = dma.vmem_to_hbm [thread:$0]  %s207_s12, 1152, %s512_s2, [#allocation4], %s394_s25, %s394_s25, %s395_s26  }
  0x99   :  { %389 = dma.done.wait [#allocation4], 1152  }
  0x9a   :  { %390 = vsyncadd [#allocation4], 4294966144 }
  0x9b   :  { %391 = dma.done.wait [#allocation9], 256  }
  0x9c   :  { %392 = vsyncadd [#allocation9], 4294967040 }
  0x9d   :  { %242 = vsyncpa [#allocation3], 1 }
  0x9e   :  { %243 = vsyncpa [#allocation6], 1 }
  0x9f   :  { %244 = vsyncpa [#allocation4], 1 }
  0xa0   :  { %245 = vsyncpa [#allocation9], 1 }

</bundles_post_ra>
